<compile_context>
chip_gen: v7x
topology: tpu7x:2x2x1
jax: 0.10.0
libtpu: 0.0.40
codegen_flags: <defaults>
</compile_context>

<pallas_src>
import functools

import jax
import jax.numpy as jnp
from jax.experimental import pallas as pl
from jax.experimental.pallas import tpu as pltpu


def polynomial_pw_kernel(x_ref, w_ref, o_ref, *, order):
    # x_ref: (1, TN) f32 lane-dense input tile
    # w_ref: (F, 1)  f32 grid-invariant weights
    # o_ref: (F, TN) output tile (N on lanes)
    x = x_ref[...]                       # (1, TN)
    w = w_ref[...]                       # (F, 1)
    # softplus(w) = log(1 + exp(w)), numerically stable form (EUP exp/log).
    sp = jnp.logaddexp(w, 0.0)           # (F, 1)
    # Integer power via Python int exponent -> lax.integer_pow (handles x < 0,
    # matching torch's `input ** order` for integer order).
    xp = x ** order                      # (1, TN)
    # Broadcast outer product: (F, 1) * (1, TN) -> (F, TN).
    o_ref[...] = (sp * xp).astype(o_ref.dtype)


def polynomial_pw_pallas(x, weight, order, *, tn_max=4096, out_dtype=jnp.float32):
    """x: (N,), weight: (F,) -> (N, F).  Gridded, lane-dense Pallas kernel."""
    n = x.shape[0]
    f = weight.shape[0]

    # Lane tile: multiple of 128, capped so the double-buffered working set
    # (2 * (TN + F*TN) * 4 bytes) stays far under scoped VMEM on v5e/v6e/v7x.
    tn = min(tn_max, pl.cdiv(n, 128) * 128)
    n_pad = pl.cdiv(n, tn) * tn
    grid = (n_pad // tn,)

    # Lane-dense x row (zero-padded to n_pad); padded tail is sliced off below.
    x_row = jnp.zeros((1, n_pad), jnp.float32).at[0, :n].set(x.astype(jnp.float32))
    w_col = weight.reshape(f, 1).astype(jnp.float32)

    out_fn = pl.pallas_call(
        functools.partial(polynomial_pw_kernel, order=order),
        out_shape=jax.ShapeDtypeStruct((f, n_pad), out_dtype),
        grid_spec=pltpu.PrefetchScalarGridSpec(
            num_scalar_prefetch=0,
            grid=grid,
            in_specs=[
                pl.BlockSpec((1, tn), lambda i: (0, i)),   # x tile (lane-dense)
                pl.BlockSpec((f, 1), lambda i: (0, 0)),    # weights, grid-invariant
            ],
            out_specs=pl.BlockSpec((f, tn), lambda i: (0, i)),
        ),
        compiler_params=pltpu.CompilerParams(
            dimension_semantics=("parallel",),             # pipeline + megacore
            vmem_limit_bytes=32 * 1024 * 1024,             # safe on v5e/v6e/v7x
        ),
    )
    out = out_fn(x_row, w_col)            # (F, N_pad), N on lanes
    return out.T[:n, :]                   # (N, F) — PyTorch layout


def polynomial_pw_ref(x, weight, order):
    """Pure-JAX reference mirroring the PyTorch forward exactly."""
    sp = jax.nn.softplus(weight)[:, None]                     # (F, 1)
    expanded = jnp.broadcast_to(x[None, :], (weight.shape[0], x.shape[0]))
    return (expanded ** order * sp).T                         # (N, F)


def polynomial_pw(x, weight, order, *, use_pallas=None, **kw):
    """Dispatch: tiny problems go to fused XLA; big ones to the Pallas kernel."""
    if use_pallas is None:
        # Below ~128K output elements, pallas_call launch overhead dominates.
        use_pallas = x.shape[0] * weight.shape[0] >= (1 << 17)
    if not use_pallas:
        return polynomial_pw_ref(x, weight, order)
    return polynomial_pw_pallas(x, weight, order, **kw)


if __name__ == "__main__":
    order = 2
    output_features = 4          # F
    batch = 8                    # N (one scalar input per sample)

    # Parameter init exactly as the module: torch.full((F,), 1.0)
    weight = jnp.ones((output_features,), dtype=jnp.float32)

    key = jax.random.PRNGKey(0)
    x = jax.random.normal(key, (batch,), dtype=jnp.float32)

    # Force the Pallas path to exercise the kernel at the small demo shape.
    out = polynomial_pw(x, weight, order, use_pallas=True)
    out = jax.block_until_ready(out)
    ref = polynomial_pw_ref(x, weight, order)
    assert out.shape == (batch, output_features)
    assert jnp.allclose(out, ref, atol=1e-5, rtol=1e-5)

    # Second check: multi-tile grid (grid=4 with tn_max=512) to validate the
    # pipelined / parallel path.
    x_big = jax.random.normal(jax.random.PRNGKey(1), (2048,), dtype=jnp.float32)
    out_big = polynomial_pw(x_big, weight, order, use_pallas=True, tn_max=512)
    out_big = jax.block_until_ready(out_big)
    ref_big = polynomial_pw_ref(x_big, weight, order)
    assert out_big.shape == (2048, output_features)
    assert jnp.allclose(out_big, ref_big, atol=1e-5, rtol=1e-5)

    print("KERNEL_OK")
</pallas_src>

<mosaic_0001>
module attributes {stable_mosaic.version = 11 : i64} {
  func.func @polynomial_pw_kernel(%arg0: i32, %arg1: memref<1x128xf32, #tpu.memory_space<vmem>>, %arg2: memref<4x1xf32, #tpu.memory_space<vmem>>, %arg3: memref<4x128xf32, #tpu.memory_space<vmem>>) attributes {dimension_semantics = [#tpu.dimension_semantics<parallel>], iteration_bounds = array<i64: 1>, scalar_prefetch = 0 : i64, scratch_operands = 0 : i64, tpu.core_type = #tpu.core_type<tc>, window_params = [{transform_indices = @transform_0, window_bounds = array<i64: 1, 128>}, {pipeline_mode = #tpu.pipeline_mode<synchronous>, transform_indices = @transform_1, window_bounds = array<i64: 4, 1>}, {transform_indices = @transform_2, window_bounds = array<i64: 4, 128>}]} {
    %c0 = arith.constant 0 : index
    %c0_0 = arith.constant 0 : index
    %0 = vector.load %arg1[%c0, %c0_0] : memref<1x128xf32, #tpu.memory_space<vmem>>, vector<1x128xf32>
    %c0_1 = arith.constant 0 : index
    %c0_2 = arith.constant 0 : index
    %1 = vector.load %arg2[%c0_1, %c0_2] : memref<4x1xf32, #tpu.memory_space<vmem>>, vector<4x1xf32>
    %cst = arith.constant 0.000000e+00 : f32
    %2 = vector.broadcast %cst : f32 to vector<4x1xf32>
    %3 = arith.maximumf %1, %2 : vector<4x1xf32>
    %4 = vector.broadcast %cst : f32 to vector<4x1xf32>
    %5 = arith.subf %1, %4 : vector<4x1xf32>
    %6 = arith.cmpf one, %5, %5 : vector<4x1xf32>
    %7 = vector.broadcast %cst : f32 to vector<4x1xf32>
    %8 = arith.addf %1, %7 : vector<4x1xf32>
    %9 = math.absf %5 : vector<4x1xf32>
    %cst_3 = arith.constant 0.000000e+00 : f32
    %10 = vector.broadcast %cst_3 : f32 to vector<4x1xf32>
    %11 = arith.subf %10, %9 : vector<4x1xf32>
    %12 = math.exp %11 : vector<4x1xf32>
    %13 = math.log1p %12 : vector<4x1xf32>
    %14 = arith.addf %3, %13 : vector<4x1xf32>
    %15 = arith.select %6, %8, %14 : vector<4x1xi1>, vector<4x1xf32>
    %16 = arith.mulf %0, %0 : vector<1x128xf32>
    %17 = vector.broadcast %15 : vector<4x1xf32> to vector<4x128xf32>
    %18 = vector.broadcast %16 : vector<1x128xf32> to vector<4x128xf32>
    %19 = arith.mulf %17, %18 : vector<4x128xf32>
    %c0_4 = arith.constant 0 : index
    %c0_5 = arith.constant 0 : index
    %20 = vector.load %arg3[%c0_4, %c0_5] : memref<4x128xf32, #tpu.memory_space<vmem>>, vector<4x128xf32>
    tpu.vector_store %arg3[%c0_4, %c0_5], %19 {strides = array<i32>} : memref<4x128xf32, #tpu.memory_space<vmem>>, vector<4x128xf32>,
    return
  }
  func.func @transform_0(%arg0: i32) -> (i32, i32) {
    %c0_i32 = arith.constant 0 : i32
    %c0_i32_0 = arith.constant 0 : i32
    return %c0_i32, %arg0 : i32, i32
  }
  func.func @transform_1(%arg0: i32) -> (i32, i32) {
    %c0_i32 = arith.constant 0 : i32
    %c0_i32_0 = arith.constant 0 : i32
    %c0_i32_1 = arith.constant 0 : i32
    return %c0_i32, %c0_i32_0 : i32, i32
  }
  func.func @transform_2(%arg0: i32) -> (i32, i32) {
    %c0_i32 = arith.constant 0 : i32
    %c0_i32_0 = arith.constant 0 : i32
    return %c0_i32, %arg0 : i32, i32
  }
}

</mosaic_0001>

<bundles_post_ra>
// kernel: tpu_custom_call.1
= control target key start
LH: loop header
LB: loop body
LE: loop exit
PB: predicated region body
PF: predicated region fallthrough
CT: control target
= control target key end

     0   :  { %s126_s0 = inlined_call_operand.vmem [shape: f32[1,128], index: 0, kind: input, shape index: {}]   ;;  %s127_s1 = inlined_call_operand.vmem [shape: f32[4,1], index: 1, kind: input, shape index: {}]   ;;  %s128_s2 = inlined_call_operand.hbm [shape: f32[4,128], index: 2, kind: output, shape index: {}]  }
   0x1   :  { %v13_v0 = vld [vmem:[%s127_s1] sm:$0xf] }
   0x2   :  { %7 = vsyncpa [#allocation3], 0  ;;  %v91_v1 = vmov 0   ;;  %v17_v2 = vand.u32 2147483647, %v13_v0  ;;  %v14_v12 = vmax.f32 %v13_v0, 0.0  ;;  %vm15_vm1 = vcmp.ne.f32.partialorder %v13_v0, %v13_v0 }
   0x3   :  { %62 = vset.pattern.permute.xlu0 %v91_v1  ;;  %v39_v17 = vlaneseq  ;;  %v12_v19 = vld [vmem:[%s126_s0] sm:$0x1]  ;;  %s92_s12 = smov [#allocation2]  }
   0x4   :  { %v18_v3 = vsub.f32 0.0, %v17_v2  ;;  %v32_v21 = vmul.f32 %v12_v19, %v12_v19  ;;  %s52_s13 = sshll.u32 %s92_s12, 4  ;;  %s53_s13 = int_to_ptr.vmem [resolvable:$true] %s52_s13 }
   0x5   :  { %v40_v18 = vshrl.u32 %v39_v17, 7  ;;  %s67_s14 = scalar_lea.vmem %s53_s13, 64  ;;  %p72_p1 = scmp.lt.s32.totalorder %s53_s13, %s53_s13 }
   0x6   :  { %v19_v4 = vmul.f32 1.442695, %v18_v3  ;;  %p68_p0 = scmp.ne.s32.totalorder %s53_s13, %s67_s14  ;;  %p73_p2 = scmp.lt.s32.totalorder %s67_s14, %s67_s14 }
   0x7   :  { %v41_v20 = vsub.s32 0, %v40_v18 }
   0x8   :  { %63 = vpow2.f32 %v19_v4  ;;  %p74_p3 = por %p73_p2, %p72_p1 }
   0x9   :  { %v42_v22 = vrot.slane %v32_v21, %v41_v20 }
   0xa   :  { %p75_p4 = pnand %p74_p3, %p68_p0 }
  0x12   :  { %v64_v5 = vpop.eup %63 }
  0x13   :  { %v21_v6 = vadd.f32 1.0, %v64_v5  ;;  %v24_v7 = vmul.f32 -0.5, %v64_v5  ;;  %v27_v9 = vand.u32 2147483647, %v64_v5 }
  0x15   :  { %65 = vlog2.f32 %v21_v6  ;;  %v25_v8 = vadd.f32 1.0, %v24_v7  ;;  %vm28_vm0 = vcmp.lt.f32.partialorder %v27_v9, 0.0004427343 }
  0x17   :  { %v26_v10 = vmul.f32 %v64_v5, %v25_v8 }
  0x1f   :  { %v66_v11 = vpop.eup %65 }
  0x20   :  { %v23_v13 = vmul.f32 0.6931472, %v66_v11 }
  0x22   :  { %v29_v14 = vsel %vm28_vm0, %v26_v10, %v23_v13 }
  0x23   :  { %v30_v15 = vadd.f32 %v29_v14, %v14_v12 }
  0x25   :  { %v31_v16 = vsel %vm15_vm1, %v13_v0, %v30_v15 }
  0x26   :  { %35 = vperm.xlu0 %62, %v31_v16  }
  0xa5   :  { %v36_v23 = vpop.permute.xlu0 %35 }
  0xa6   :  { %v44_v24 = vmul.f32 %v42_v22, %v36_v23 }
  0xa8   :  { %45 = vst [vmem:[#allocation2] sm:$0xf] %v44_v24 }
  0xa9   :  { %78 = shalt.err (!%p75_p4)
}
  0xaa   :  { %s79_s0 = scalar_lea.hbm %s128_s2, 64 }
  0xab   :  { %p80_p5 = scmp.ne.s32.totalorder %s128_s2, %s79_s0  ;;  %p83_p6 = scmp.lt.u32.totalorder %s79_s0, %s128_s2 }
  0xad   :  { %p85_p7 = pnand %p83_p6, %p80_p5 }
  0xaf   :  { %88 = shalt.err (!%p85_p7)
}
  0xb0   :  { %55 = dma.vmem_to_hbm [thread:$0]  %s53_s13, 64, %s128_s2, [#allocation3]  }
  0xb1   :  { %89 = dma.done.wait [#allocation3], 64  }
  0xb2   :  { %90 = vsyncadd [#allocation3], 4294967232 }
  0xb3   :  { %59 = vsyncpa [#allocation3], 1 }

</bundles_post_ra>
